<compile_context>
chip_gen: v7x
topology: tpu7x:2x2x1
jax: 0.10.0
libtpu: 0.0.40
codegen_flags: <defaults>
</compile_context>

<pallas_src>
import functools
import math

import jax
import jax.numpy as jnp
from jax import lax
from jax.experimental import pallas as pl
from jax.experimental.pallas import tpu as pltpu


# ----------------------------- Pallas kernels ------------------------------

def _mamba_kernel(hid_ref, inw_ref, convw_ref, convb_ref, wproj_ref, dtb_ref,
                  a_ref, dskip_ref, outw_ref, o_ref, y_sc, *, L, nw, ds, k):
    dm = hid_ref.shape[1]
    M = hid_ref.shape[2]                               # == L * nw
    di = dskip_ref.shape[0]

    # fused norm1: LayerNorm over channels (axis 0), no affine, eps=1e-5.
    hid = hid_ref[0]                                   # (dm, M)
    mu = jnp.mean(hid, axis=0, keepdims=True)
    hc = hid - mu
    var = jnp.mean(hc * hc, axis=0, keepdims=True)
    hid = hc * lax.rsqrt(var + 1e-5)

    # fused in_proj: single (2*di, dm) x (dm, M) matmul; x/z via row slices.
    xz = jnp.dot(inw_ref[...], hid, preferred_element_type=jnp.float32)
    x_in = xz[:di]                                     # (di, M)
    z = xz[di:]                                        # (di, M)

    # causal depthwise conv along L (one time step == nw lanes) + SiLU.
    cw = convw_ref[...]                                # (k, di, 1)
    acc = x_in * cw[k - 1]
    for j in range(k - 1):
        shift = (k - 1 - j) * nw
        if shift >= M:
            continue
        shifted = jnp.concatenate(
            [jnp.zeros((di, shift), jnp.float32), x_in[:, :M - shift]], axis=1)
        acc = acc + shifted * cw[j]
    xc = acc + convb_ref[...]
    xc = xc * jax.nn.sigmoid(xc)                       # SiLU, (di, M)

    # fused x_proj (dt_proj folded in): single (di+2*ds, di) x (di, M) matmul.
    proj = jnp.dot(wproj_ref[...], xc, preferred_element_type=jnp.float32)
    dpre = proj[:di] + dtb_ref[...]
    # stable softplus with only exp/log/abs/max (safe Mosaic lowering)
    delta = jnp.maximum(dpre, 0.0) + jnp.log(1.0 + jnp.exp(-jnp.abs(dpre)))
    Bmat = proj[di:di + ds]                            # (ds, M)
    Cmat = proj[di + ds:]                              # (ds, M)

    # hoist all transcendentals out of the sequential scan.
    a_all = a_ref[...]                                 # (ds, di, 1)
    dx = delta * xc                                    # (di, M)
    dA = [jnp.exp(delta * a_all[s]) for s in range(ds)]        # ds x (di, M)
    dBx = [dx * Bmat[s:s + 1] for s in range(ds)]               # ds x (di, M)

    # sequential selective scan, fully unrolled (L, nw static; ds usually 1).
    h = [jnp.zeros((di, nw), jnp.float32) for _ in range(ds)]
    for t in range(L):
        cols = slice(t * nw, (t + 1) * nw)
        y_t = None
        for s in range(ds):
            h[s] = dA[s][:, cols] * h[s] + dBx[s][:, cols]
            term = h[s] * Cmat[s:s + 1, cols]
            y_t = term if y_t is None else y_t + term
        y_sc[:, cols] = y_t

    # D-skip + SiLU(z) gate + out_proj; lane-dense (M-wide) output store.
    y = (y_sc[...] + dskip_ref[...] * xc) * (z * jax.nn.sigmoid(z))
    o_ref[0] = jnp.dot(outw_ref[...], y, preferred_element_type=jnp.float32)


def _ln_mlp_kernel(x_ref, w1t_ref, b1_ref, w2t_ref, b2_ref, o_ref):
    # fused norm2 (no affine) -> fc1 -> GELU -> fc2, transposed layout:
    # tokens on the 128-lane axis -> lane-dense output stores.
    x = x_ref[...]                                     # (C, TM)
    mu = jnp.mean(x, axis=0, keepdims=True)
    xc = x - mu
    var = jnp.mean(xc * xc, axis=0, keepdims=True)
    xn = xc * lax.rsqrt(var + 1e-5)
    h = jnp.dot(w1t_ref[...], xn, preferred_element_type=jnp.float32)
    h = h + b1_ref[...]
    h = jax.nn.gelu(h, approximate=False)
    o_ref[...] = jnp.dot(w2t_ref[...], h,
                         preferred_element_type=jnp.float32) + b2_ref[...]


def _linear_ln_kernel(x_ref, wt_ref, b_ref, o_ref):
    # patch-embed projection (Conv3d k==stride as a matmul) + LayerNorm
    # (no affine), transposed layout (tokens on lanes -> lane-dense stores).
    x = x_ref[...]                                     # (K, TM)
    wt = wt_ref[...]                                   # (F, K)
    if x.shape[0] == 1:                                # degenerate K==1 case
        y = wt * x
    else:
        y = jnp.dot(wt, x, preferred_element_type=jnp.float32)
    y = y + b_ref[...]
    mu = jnp.mean(y, axis=0, keepdims=True)
    yc = y - mu
    var = jnp.mean(yc * yc, axis=0, keepdims=True)
    o_ref[...] = yc * lax.rsqrt(var + 1e-5)


def _conv3_kernel(x_ref, w_ref, b_ref, o_ref, *, act):
    # one replicate-padded volume per sample; loop depth in-kernel and
    # accumulate all 27 taps with a single K=27*C matmul (in-VMEM im2col).
    _, Dp2, Hp2, Wp2, C = x_ref.shape
    D, H, W = Dp2 - 2, Hp2 - 2, Wp2 - 2
    Co = o_ref.shape[4]
    xs = x_ref[0]                                      # (D+2, H+2, W+2, C)
    w2d = w_ref[...]                                   # (27*C, Co)
    b = b_ref[...]                                     # (1, Co)
    for d in range(D):
        cols = []
        for kd in range(3):
            for kh in range(3):
                for kw in range(3):
                    cols.append(
                        xs[d + kd, kh:kh + H, kw:kw + W, :].reshape(H * W, C))
        col = jnp.concatenate(cols, axis=1)            # (H*W, 27*C)
        y = jnp.dot(col, w2d, preferred_element_type=jnp.float32) + b
        if act == "relu":
            y = jnp.maximum(y, 0.0)
        o_ref[0, d] = y.reshape(H, W, Co)


# ----------------------------- kernel wrappers ------------------------------

def _round_up(v, m):
    return ((v + m - 1) // m) * m


def mamba_ssm(win_cm, p):
    """win_cm: (C, L, NW) raw (pre-norm1) window activations, channel-major."""
    dm, L, NW = win_cm.shape
    di = p["D"].shape[0]
    ds = p["A_t"].shape[0]
    k = p["conv_w"].shape[0]
    dt_rank = p["dtproj_w"].shape[0]

    # pack windows onto the lane axis: 128-window groups when NW > 128,
    # otherwise a single group of width NW (no lane-padding waste).
    if NW <= 128:
        nwg, ngroups = NW, 1
        xg = win_cm.reshape(1, dm, L * NW)
    else:
        nwg = 128
        ngroups = (NW + 127) // 128
        NWp = ngroups * 128
        wpad = jnp.pad(win_cm, ((0, 0), (0, 0), (0, NWp - NW)))
        xg = wpad.reshape(dm, L, ngroups, nwg)
        xg = jnp.transpose(xg, (2, 0, 1, 3)).reshape(ngroups, dm, L * nwg)
    Mg = L * nwg

    # fused kernel-layout weights (tiny); dt_proj folded into x_proj (exact).
    inw_t = p["in_w"].T                                          # (2*di, dm)
    convw = p["conv_w"][:, :, None]                              # (k, di, 1)
    convb = p["conv_b"][:, None]                                 # (di, 1)
    wdelta_t = (p["xproj_w"][:, :dt_rank] @ p["dtproj_w"]).T     # (di, di)
    bproj_t = p["xproj_w"][:, dt_rank:dt_rank + ds].T            # (ds, di)
    cproj_t = p["xproj_w"][:, dt_rank + ds:].T                   # (ds, di)
    wproj = jnp.concatenate([wdelta_t, bproj_t, cproj_t], axis=0)
    dtb = p["dtproj_b"][:, None]                                 # (di, 1)
    a_r = p["A_t"][:, :, None]                                   # (ds, di, 1)
    d_r = p["D"][:, None]                                        # (di, 1)
    outw_t = p["out_w"].T                                        # (dm, di)

    # VMEM budget from the actual live buffers (temporaries + scratch + I/O),
    # capped at 48 MiB so it also fits v7x's 64 MiB/TC with headroom.
    est = 4 * Mg * (4 * dm + (10 + 3 * ds) * di + 4 * ds)
    est += 4 * (2 * di * dm + (di + 2 * ds) * di + dm * di)
    vmem_limit = int(min(48 * 1024 * 1024, max(32 * 1024 * 1024, 6 * est)))

    kern = functools.partial(_mamba_kernel, L=L, nw=nwg, ds=ds, k=k)
    # TODO(synk): with ngroups == 1 (shipped configs) v7x's second TensorCore
    # idles; fold another independent axis onto the group grid for large runs.
    out = pl.pallas_call(
        kern,
        out_shape=jax.ShapeDtypeStruct((ngroups, dm, Mg), jnp.float32),
        grid=(ngroups,),
        in_specs=[
            pl.BlockSpec((1, dm, Mg), lambda g: (g, 0, 0)),
            pl.BlockSpec((2 * di, dm), lambda g: (0, 0)),
            pl.BlockSpec((k, di, 1), lambda g: (0, 0, 0)),
            pl.BlockSpec((di, 1), lambda g: (0, 0)),
            pl.BlockSpec((di + 2 * ds, di), lambda g: (0, 0)),
            pl.BlockSpec((di, 1), lambda g: (0, 0)),
            pl.BlockSpec((ds, di, 1), lambda g: (0, 0, 0)),
            pl.BlockSpec((di, 1), lambda g: (0, 0)),
            pl.BlockSpec((dm, di), lambda g: (0, 0)),
        ],
        out_specs=pl.BlockSpec((1, dm, Mg), lambda g: (g, 0, 0)),
        scratch_shapes=[pltpu.VMEM((di, Mg), jnp.float32)],
        compiler_params=pltpu.CompilerParams(
            dimension_semantics=("parallel",),
            vmem_limit_bytes=vmem_limit),
    )(xg, inw_t, convw, convb, wproj, dtb, a_r, d_r, outw_t)

    if NW <= 128:
        return out.reshape(dm, L, NW)
    out = out.reshape(ngroups, dm, L, nwg)
    out = jnp.transpose(out, (1, 2, 0, 3)).reshape(dm, L, ngroups * nwg)
    return out[:, :, :NW]


def ln_mlp(x, w1, b1, w2, b2):
    # fused norm2 -> fc1 -> GELU -> fc2, tokens on the lane axis.
    B, D, H, W, C = x.shape
    M = B * D * H * W
    hdim = w1.shape[1]
    xT = x.reshape(M, C).T                             # (C, M)
    TM = min(512, _round_up(M, 128))
    Mp = _round_up(M, TM)
    if Mp != M:
        xT = jnp.pad(xT, ((0, 0), (0, Mp - M)))
    out = pl.pallas_call(
        _ln_mlp_kernel,
        out_shape=jax.ShapeDtypeStruct((C, Mp), jnp.float32),
        grid=(Mp // TM,),
        in_specs=[pl.BlockSpec((C, TM), lambda i: (0, i)),
                  pl.BlockSpec((hdim, C), lambda i: (0, 0)),
                  pl.BlockSpec((hdim, 1), lambda i: (0, 0)),
                  pl.BlockSpec((C, hdim), lambda i: (0, 0)),
                  pl.BlockSpec((C, 1), lambda i: (0, 0))],
        out_specs=pl.BlockSpec((C, TM), lambda i: (0, i)),
        compiler_params=pltpu.CompilerParams(
            dimension_semantics=("parallel",)),
    )(xT, w1.T, b1[:, None], w2.T, b2[:, None])
    return out[:, :M].T.reshape(B, D, H, W, C)


def linear_ln(x2d, w, b):
    # patch-embed projection + LayerNorm, tokens on the lane axis.
    M, K = x2d.shape
    F = w.shape[1]
    xT = x2d.T                                         # (K, M)
    TM = min(512, _round_up(M, 128))
    Mp = _round_up(M, TM)
    if Mp != M:
        xT = jnp.pad(xT, ((0, 0), (0, Mp - M)))
    out = pl.pallas_call(
        _linear_ln_kernel,
        out_shape=jax.ShapeDtypeStruct((F, Mp), jnp.float32),
        grid=(Mp // TM,),
        in_specs=[pl.BlockSpec((K, TM), lambda i: (0, i)),
                  pl.BlockSpec((F, K), lambda i: (0, 0)),
                  pl.BlockSpec((F, 1), lambda i: (0, 0))],
        out_specs=pl.BlockSpec((F, TM), lambda i: (0, i)),
        compiler_params=pltpu.CompilerParams(
            dimension_semantics=("parallel",)),
    )(xT, w.T, b[:, None])
    return out[:, :M].T


def conv3x3_replicate(x, w, b, act):
    # x: (N, D, H, W, C); w: (3, 3, 3, C, Co);
    # PyTorch Conv3d(padding=1, padding_mode='replicate') equivalent.
    N, D, H, W, C = x.shape
    Co = w.shape[-1]
    xp = jnp.pad(x, ((0, 0), (1, 1), (1, 1), (1, 1), (0, 0)), mode="edge")
    Dp, Hp, Wp = D + 2, H + 2, W + 2
    # TODO(synk): for large volumes tile depth with halo slabs instead of one
    # whole-volume block (trivially fits VMEM at the shipped sizes).
    out = pl.pallas_call(
        functools.partial(_conv3_kernel, act=act),
        out_shape=jax.ShapeDtypeStruct((N, D, H, W, Co), jnp.float32),
        grid=(N,),
        in_specs=[
            pl.BlockSpec((1, Dp, Hp, Wp, C), lambda n: (n, 0, 0, 0, 0)),
            pl.BlockSpec((27 * C, Co), lambda n: (0, 0)),
            pl.BlockSpec((1, Co), lambda n: (0, 0)),
        ],
        out_specs=pl.BlockSpec((1, D, H, W, Co), lambda n: (n, 0, 0, 0, 0)),
        compiler_params=pltpu.CompilerParams(
            dimension_semantics=("parallel",)),
    )(xp, w.reshape(27 * C, Co), b.reshape(1, Co))
    return out


# ----------------------------- model glue (JAX) -----------------------------

def get_window_size(x_size, window_size, shift_size=None):
    ws = list(window_size)
    ss = list(shift_size) if shift_size is not None else None
    for i in range(len(x_size)):
        if x_size[i] <= window_size[i]:
            ws[i] = x_size[i]
            if ss is not None:
                ss[i] = 0
    if ss is None:
        return tuple(ws)
    return tuple(ws), tuple(ss)


def window_partition_cm(x, ws):
    # (B, D, H, W, C) -> (C, L, NW), channel-major for the SSM kernel.
    B, D, H, W, C = x.shape
    x = x.reshape(B, D // ws[0], ws[0], H // ws[1], ws[1], W // ws[2], ws[2], C)
    x = jnp.transpose(x, (7, 2, 4, 6, 0, 1, 3, 5))
    return x.reshape(C, ws[0] * ws[1] * ws[2], -1)


def window_reverse_cm(win, ws, B, D, H, W):
    C = win.shape[0]
    x = win.reshape(C, ws[0], ws[1], ws[2], B,
                    D // ws[0], H // ws[1], W // ws[2])
    x = jnp.transpose(x, (4, 5, 1, 6, 2, 7, 3, 0))
    return x.reshape(B, D, H, W, C)


def patch_embed(x, w, b, patch_size):
    # Conv3d(kernel=stride=patch_size, bias) + LayerNorm(no affine), fused.
    N, D, H, W, C = x.shape
    p0, p1, p2 = patch_size
    x = jnp.pad(x, ((0, 0),
                    (0, (p0 - D % p0) % p0),
                    (0, (p1 - H % p1) % p1),
                    (0, (p2 - W % p2) % p2),
                    (0, 0)))
    N, D, H, W, C = x.shape
    Dn, Hn, Wn = D // p0, H // p1, W // p2
    x = x.reshape(N, Dn, p0, Hn, p1, Wn, p2, C)
    x = jnp.transpose(x, (0, 1, 3, 5, 2, 4, 6, 7))
    x2 = x.reshape(N * Dn * Hn * Wn, p0 * p1 * p2 * C)
    y = linear_ln(x2, w, b)
    return y.reshape(N, Dn, Hn, Wn, w.shape[1])


def mamba_block(x, p, window_size, shift_size):
    B, D, H, W, C = x.shape
    ws, ss = get_window_size((D, H, W), window_size, shift_size)
    shortcut = x
    # norm1 (no affine) is fused into the SSM kernel; LN commutes with the
    # token permutation of roll/partition, and LN(0)=0 matches the reference's
    # zero padding applied after norm1.
    pad_d1 = (ws[0] - D % ws[0]) % ws[0]
    pad_b = (ws[1] - H % ws[1]) % ws[1]
    pad_r = (ws[2] - W % ws[2]) % ws[2]
    xp = jnp.pad(x, ((0, 0), (0, pad_d1), (0, pad_b), (0, pad_r), (0, 0)))
    _, Dp, Hp, Wp, _ = xp.shape
    if any(s > 0 for s in ss):
        xs = jnp.roll(xp, shift=(-ss[0], -ss[1], -ss[2]), axis=(1, 2, 3))
    else:
        xs = xp
    win = window_partition_cm(xs, ws)            # (C, L, NW)
    win = mamba_ssm(win, p["ssm"])
    xs = window_reverse_cm(win, ws, B, Dp, Hp, Wp)
    if any(s > 0 for s in ss):
        xp = jnp.roll(xs, shift=(ss[0], ss[1], ss[2]), axis=(1, 2, 3))
    else:
        xp = xs
    x = shortcut + xp[:, :D, :H, :W, :]
    # part2: fused norm2 -> fc1 -> GELU -> fc2 residual.
    h = ln_mlp(x, p["fc1_w"], p["fc1_b"], p["fc2_w"], p["fc2_b"])
    return x + h


def basic_layer(x, p, window_size, patch_size):
    if "patch_w" in p:
        x = patch_embed(x, p["patch_w"], p["patch_b"], patch_size)
    shift = tuple(i // 2 for i in window_size)
    for i, bp in enumerate(p["blocks"]):
        ss = (0, 0, 0) if i % 2 == 0 else shift
        x = mamba_block(x, bp, window_size, ss)
    return x


def mamba_forward(x, params, cfg):
    # x: (N, V, C, D, H, W) -- PyTorch layout at the boundary.
    N, V, C, D, H, W = x.shape
    outs = []
    for v in range(V):
        xv = jnp.transpose(x[:, v], (0, 2, 3, 4, 1)).astype(jnp.float32)
        for li, lp in enumerate(params["vars"][v]["layers"]):
            ps = cfg["patch_size"] if li == 0 else (1, 1, 1)
            xv = basic_layer(xv, lp, cfg["window_size"][li], ps)
        pv = params["vars"][v]["proj"]
        xv = conv3x3_replicate(xv, pv["w1"], pv["b1"], act="relu")
        xv = conv3x3_replicate(xv, pv["w2"], pv["b2"], act="none")
        outs.append(jnp.transpose(xv, (0, 4, 1, 2, 3))[:, None])
    return jnp.concatenate(outs, axis=1)


# ----------------------------- parameter init -------------------------------

def _w(key, shape, scale=0.02):
    return scale * jax.random.normal(key, shape, dtype=jnp.float32)


def make_ssm_params(key, d_model, d_state, expand, d_conv, dt_min, dt_max):
    di = expand * d_model
    dt_rank = math.ceil(d_model / 16)
    ks = jax.random.split(key, 5)
    dt = jnp.linspace(dt_min, dt_max, di, dtype=jnp.float32)
    dt_bias = dt + jnp.log(-jnp.expm1(-dt))             # inverse softplus
    a_init = jnp.arange(1, d_state + 1, dtype=jnp.float32)[:, None]
    return dict(
        in_w=_w(ks[0], (d_model, 2 * di)),
        conv_w=_w(ks[1], (d_conv, di)),
        conv_b=jnp.zeros((di,), jnp.float32),
        xproj_w=_w(ks[2], (di, dt_rank + 2 * d_state)),
        dtproj_w=_w(ks[3], (dt_rank, di)),
        dtproj_b=dt_bias,
        A_t=-jnp.broadcast_to(a_init, (d_state, di)),   # A = -exp(A_log)
        D=jnp.ones((di,), jnp.float32),
        out_w=_w(ks[4], (di, d_model)),
    )


def make_block_params(key, dim, mlp_ratio, d_state, expand, d_conv,
                      dt_min, dt_max):
    hidden = int(dim * mlp_ratio)
    ks = jax.random.split(key, 3)
    return dict(
        ssm=make_ssm_params(ks[0], dim, d_state, expand, d_conv, dt_min, dt_max),
        fc1_w=_w(ks[1], (dim, hidden)), fc1_b=jnp.zeros((hidden,), jnp.float32),
        fc2_w=_w(ks[2], (hidden, dim)), fc2_b=jnp.zeros((dim,), jnp.float32),
    )


def make_layer_params(key, in_dim, dim, depth, patch_size, **ssm_cfg):
    ks = jax.random.split(key, depth + 1)
    p = dict(blocks=[make_block_params(ks[i + 1], dim, **ssm_cfg)
                     for i in range(depth)])
    if in_dim != dim or patch_size != (1, 1, 1):
        kin = patch_size[0] * patch_size[1] * patch_size[2] * in_dim
        p["patch_w"] = _w(ks[0], (kin, dim))
        p["patch_b"] = jnp.zeros((dim,), jnp.float32)
    return p


def make_params(key, cfg):
    vars_params = []
    for v in range(cfg["in_vars"]):
        kv = jax.random.fold_in(key, v)
        layers = []
        for li in range(len(cfg["embed_dim"])):
            in_dim = cfg["in_chans"] if li == 0 else cfg["embed_dim"][li - 1]
            dim = cfg["embed_dim"][li]
            patch = cfg["patch_size"] if li == 0 else (1, 1, 1)
            layers.append(make_layer_params(
                jax.random.fold_in(kv, li), in_dim, dim, cfg["depths"][li],
                patch, mlp_ratio=cfg["mlp_ratio"], d_state=cfg["d_state"][li],
                expand=cfg["expand"][li], d_conv=cfg["d_conv"][li],
                dt_min=cfg["dt_min"], dt_max=cfg["dt_max"]))
        c = cfg["embed_dim"][-1]
        k1, k2 = jax.random.split(jax.random.fold_in(kv, 1000))
        proj = dict(w1=_w(k1, (3, 3, 3, c, c)), b1=jnp.zeros((c,), jnp.float32),
                    w2=_w(k2, (3, 3, 3, c, c)), b2=jnp.zeros((c,), jnp.float32))
        vars_params.append(dict(layers=layers, proj=proj))
    return dict(vars=vars_params)


# ---------------------------------- main -------------------------------------

if __name__ == "__main__":
    cfg = dict(in_vars=2, in_chans=1, embed_dim=[16, 16],
               window_size=[(2, 4, 4), (8, 1, 1)], depths=[2, 1],
               mlp_ratio=4.0, patch_size=(1, 1, 1),
               d_state=[1, 1], d_conv=[3, 3], expand=[1, 1],
               dt_min=0.01, dt_max=0.1)

    key = jax.random.PRNGKey(0)
    params = make_params(jax.random.fold_in(key, 1), cfg)

    N, V, C, D, H, W = 1, cfg["in_vars"], cfg["in_chans"], 4, 8, 8
    x = jax.random.normal(jax.random.fold_in(key, 2),
                          (N, V, C, D, H, W), dtype=jnp.float32)

    out = mamba_forward(x, params, cfg)
    out = jax.block_until_ready(out)
    assert out.shape == (N, V, cfg["embed_dim"][-1], D, H, W), out.shape
    assert bool(jnp.all(jnp.isfinite(out)))
    print("KERNEL_OK")
</pallas_src>

<mosaic_0001>
module attributes {stable_mosaic.version = 11 : i64} {
  func.func @_linear_ln_kernel(%arg0: i32, %arg1: memref<1x256xf32, #tpu.memory_space<vmem>>, %arg2: memref<16x1xf32, #tpu.memory_space<vmem>>, %arg3: memref<16x1xf32, #tpu.memory_space<vmem>>, %arg4: memref<16x256xf32, #tpu.memory_space<vmem>>) attributes {dimension_semantics = [#tpu.dimension_semantics<parallel>], iteration_bounds = array<i64: 1>, scalar_prefetch = 0 : i64, scratch_operands = 0 : i64, tpu.core_type = #tpu.core_type<tc>, window_params = [{transform_indices = @transform_0, window_bounds = array<i64: 1, 256>}, {pipeline_mode = #tpu.pipeline_mode<synchronous>, transform_indices = @transform_1, window_bounds = array<i64: 16, 1>}, {pipeline_mode = #tpu.pipeline_mode<synchronous>, transform_indices = @transform_2, window_bounds = array<i64: 16, 1>}, {transform_indices = @transform_3, window_bounds = array<i64: 16, 256>}]} {
    %c0 = arith.constant 0 : index
    %c0_0 = arith.constant 0 : index
    %0 = vector.load %arg1[%c0, %c0_0] : memref<1x256xf32, #tpu.memory_space<vmem>>, vector<1x256xf32>
    %c0_1 = arith.constant 0 : index
    %c0_2 = arith.constant 0 : index
    %1 = vector.load %arg2[%c0_1, %c0_2] : memref<16x1xf32, #tpu.memory_space<vmem>>, vector<16x1xf32>
    %2 = vector.broadcast %1 : vector<16x1xf32> to vector<16x256xf32>
    %3 = vector.broadcast %0 : vector<1x256xf32> to vector<16x256xf32>
    %4 = arith.mulf %2, %3 : vector<16x256xf32>
    %c0_3 = arith.constant 0 : index
    %c0_4 = arith.constant 0 : index
    %5 = vector.load %arg3[%c0_3, %c0_4] : memref<16x1xf32, #tpu.memory_space<vmem>>, vector<16x1xf32>
    %6 = vector.broadcast %5 : vector<16x1xf32> to vector<16x256xf32>
    %7 = arith.addf %4, %6 : vector<16x256xf32>
    %cst = arith.constant dense<0.000000e+00> : vector<256xf32>
    %8 = vector.multi_reduction <add>, %7, %cst [0] : vector<16x256xf32> to vector<256xf32>
    %9 = vector.shape_cast %8 : vector<256xf32> to vector<1x256xf32>
    %cst_5 = arith.constant 1.600000e+01 : f32
    %10 = vector.broadcast %cst_5 : f32 to vector<1x256xf32>
    %11 = arith.divf %9, %10 : vector<1x256xf32>
    %12 = vector.broadcast %11 : vector<1x256xf32> to vector<16x256xf32>
    %13 = arith.subf %7, %12 : vector<16x256xf32>
    %14 = arith.mulf %13, %13 : vector<16x256xf32>
    %cst_6 = arith.constant dense<0.000000e+00> : vector<256xf32>
    %15 = vector.multi_reduction <add>, %14, %cst_6 [0] : vector<16x256xf32> to vector<256xf32>
    %16 = vector.shape_cast %15 : vector<256xf32> to vector<1x256xf32>
    %cst_7 = arith.constant 1.600000e+01 : f32
    %17 = vector.broadcast %cst_7 : f32 to vector<1x256xf32>
    %18 = arith.divf %16, %17 : vector<1x256xf32>
    %cst_8 = arith.constant 9.99999974E-6 : f32
    %19 = vector.broadcast %cst_8 : f32 to vector<1x256xf32>
    %20 = arith.addf %18, %19 : vector<1x256xf32>
    %21 = math.rsqrt %20 : vector<1x256xf32>
    %22 = vector.broadcast %21 : vector<1x256xf32> to vector<16x256xf32>
    %23 = arith.mulf %13, %22 : vector<16x256xf32>
    %c0_9 = arith.constant 0 : index
    %c0_10 = arith.constant 0 : index
    %24 = vector.load %arg4[%c0_9, %c0_10] : memref<16x256xf32, #tpu.memory_space<vmem>>, vector<16x256xf32>
    tpu.vector_store %arg4[%c0_9, %c0_10], %23 {strides = array<i32>} : memref<16x256xf32, #tpu.memory_space<vmem>>, vector<16x256xf32>,
    return
  }
  func.func @transform_0(%arg0: i32) -> (i32, i32) {
    %c0_i32 = arith.constant 0 : i32
    %c0_i32_0 = arith.constant 0 : i32
    return %c0_i32, %arg0 : i32, i32
  }
  func.func @transform_1(%arg0: i32) -> (i32, i32) {
    %c0_i32 = arith.constant 0 : i32
    %c0_i32_0 = arith.constant 0 : i32
    %c0_i32_1 = arith.constant 0 : i32
    return %c0_i32, %c0_i32_0 : i32, i32
  }
  func.func @transform_2(%arg0: i32) -> (i32, i32) {
    %c0_i32 = arith.constant 0 : i32
    %c0_i32_0 = arith.constant 0 : i32
    %c0_i32_1 = arith.constant 0 : i32
    return %c0_i32, %c0_i32_0 : i32, i32
  }
  func.func @transform_3(%arg0: i32) -> (i32, i32) {
    %c0_i32 = arith.constant 0 : i32
    %c0_i32_0 = arith.constant 0 : i32
    return %c0_i32, %arg0 : i32, i32
  }
}

</mosaic_0001>

<bundles_post_ra>
// kernel: tpu_custom_call.1
= control target key start
LH: loop header
LB: loop body
LE: loop exit
PB: predicated region body
PF: predicated region fallthrough
CT: control target
= control target key end

     0   :  { %v162_v2 = vmov 0   ;;  %s213_s0 = inlined_call_operand.vmem [shape: f32[1,256], index: 0, kind: input, shape index: {}]   ;;  %s214_s1 = inlined_call_operand.vmem [shape: f32[16,1], index: 1, kind: input, shape index: {}]   ;;  %s215_s2 = inlined_call_operand.vmem [shape: f32[16,1], index: 2, kind: input, shape index: {}]   ;;  %s216_s3 = inlined_call_operand.hbm [shape: f32[16,256], index: 3, kind: output, shape index: {}]  }
   0x1   :  { %v43_v0 = vld [vmem:[%s215_s2] sm:$0xff]  ;;  %133 = vset.pattern.permute.xlu1 %v162_v2  ;;  %132 = vset.pattern.permute.xlu0 %v162_v2 }
   0x2   :  { %v16_v1 = vld [vmem:[%s214_s1] sm:$0xff] }
   0x3   :  { %8 = vsyncpa [#allocation3], 0  ;;  %47 = vperm.xlu1 %133, %v43_v0   ;;  %20 = vperm.xlu0 %132, %v16_v1   ;;  %v44_v3 = vld [vmem:[%s215_s2 + $0x8] sm:$0xff]  ;;  %v29_v5 = vlaneseq  ;;  %v15_v9 = vld [vmem:[%s213_s0] sm:$0x3]  ;;  %s163_s0 = smov [#allocation2]  }
   0x4   :  { %v17_v4 = vld [vmem:[%s214_s1 + $0x8] sm:$0xff]  ;;  %s117_s1 = sshll.u32 %s163_s0, 4  ;;  %s118_s1 = int_to_ptr.vmem [resolvable:$true] %s117_s1 }
   0x5   :  { %v30_v6 = vshrl.u32 %v29_v5, 7  ;;  %s138_s2 = scalar_lea.vmem %s118_s1, 512  ;;  %p143_p1 = scmp.lt.s32.totalorder %s118_s1, %s118_s1 }
   0x6   :  { %p139_p0 = scmp.ne.s32.totalorder %s118_s1, %s138_s2  ;;  %p144_p2 = scmp.lt.s32.totalorder %s138_s2, %s138_s2 }
   0x7   :  { %52 = vperm.xlu1 %133, %v44_v3   ;;  %25 = vperm.xlu0 %132, %v17_v4   ;;  %v31_v7 = vsub.s32 0, %v30_v6  ;;  %v35_v8 = vsub.s32 1, %v30_v6 }
   0x8   :  { %p145_p3 = por %p144_p2, %p143_p1 }
   0x9   :  { %v32_v10 = vrot.slane %v15_v9, %v31_v7  ;;  %v36_v11 = vrot.slane %v15_v9, %v35_v8 }
   0xa   :  { %p146_p4 = pnand %p145_p3, %p139_p0 }
  0x82   :  { %v48_v12 = vpop.permute.xlu1 %47  ;;  %v21_v13 = vpop.permute.xlu0 %20 }
  0x83   :  { %v39_v14 = vmul.f32 %v32_v10, %v21_v13  ;;  %v40_v15 = vmul.f32 %v36_v11, %v21_v13 }
  0x85   :  { %v55_v20 = vadd.f32 %v48_v12, %v39_v14  ;;  %v56_v21 = vadd.f32 %v48_v12, %v40_v15 }
  0x86   :  { %v26_v16 = vpop.permute.xlu0 %25  ;;  %v53_v19 = vpop.permute.xlu1 %52 }
  0x87   :  { %v41_v17 = vmul.f32 %v32_v10, %v26_v16  ;;  %v42_v18 = vmul.f32 %v36_v11, %v26_v16 }
  0x89   :  { %v57_v22 = vadd.f32 %v53_v19, %v41_v17  ;;  %v58_v23 = vadd.f32 %v53_v19, %v42_v18 }
  0x8b   :  { %v59_v24 = vadd.f32 %v57_v22, %v55_v20  ;;  %v66_v25 = vadd.f32 %v58_v23, %v56_v21 }
  0x8d   :  { %v60_v26 = vrot.slane %v59_v24, 4  ;;  %v67_v27 = vrot.slane %v66_v25, 4 }
  0x8f   :  { %v61_v28 = vadd.f32 %v60_v26, %v59_v24  ;;  %v68_v29 = vadd.f32 %v67_v27, %v66_v25 }
  0x91   :  { %v62_v30 = vrot.slane %v61_v28, 2  ;;  %v69_v31 = vrot.slane %v68_v29, 2 }
  0x93   :  { %v63_v32 = vadd.f32 %v62_v30, %v61_v28  ;;  %v70_v33 = vadd.f32 %v69_v31, %v68_v29 }
  0x95   :  { %v64_v34 = vrot.slane %v63_v32, 1  ;;  %v71_v35 = vrot.slane %v70_v33, 1 }
  0x97   :  { %v65_v36 = vadd.f32 %v64_v34, %v63_v32  ;;  %v72_v37 = vadd.f32 %v71_v35, %v70_v33 }
  0x99   :  { %v74_v38 = vmul.f32 0.0625, %v65_v36  ;;  %v75_v39 = vmul.f32 0.0625, %v72_v37 }
  0x9b   :  { %v76_v40 = vsub.f32 %v55_v20, %v74_v38  ;;  %v77_v41 = vsub.f32 %v56_v21, %v75_v39  ;;  %v78_v42 = vsub.f32 %v57_v22, %v74_v38  ;;  %v79_v43 = vsub.f32 %v58_v23, %v75_v39 }
  0x9d   :  { %v80_v44 = vmul.f32 %v76_v40, %v76_v40  ;;  %v81_v45 = vmul.f32 %v77_v41, %v77_v41  ;;  %v82_v46 = vmul.f32 %v78_v42, %v78_v42  ;;  %v83_v47 = vmul.f32 %v79_v43, %v79_v43 }
  0x9f   :  { %v84_v48 = vadd.f32 %v82_v46, %v80_v44  ;;  %v91_v49 = vadd.f32 %v83_v47, %v81_v45 }
  0xa1   :  { %v85_v50 = vrot.slane %v84_v48, 4  ;;  %v92_v51 = vrot.slane %v91_v49, 4 }
  0xa3   :  { %v86_v52 = vadd.f32 %v85_v50, %v84_v48  ;;  %v93_v53 = vadd.f32 %v92_v51, %v91_v49 }
  0xa5   :  { %v87_v54 = vrot.slane %v86_v52, 2  ;;  %v94_v55 = vrot.slane %v93_v53, 2 }
  0xa7   :  { %v88_v56 = vadd.f32 %v87_v54, %v86_v52  ;;  %v95_v57 = vadd.f32 %v94_v55, %v93_v53 }
  0xa9   :  { %v89_v58 = vrot.slane %v88_v56, 1  ;;  %v96_v59 = vrot.slane %v95_v57, 1 }
  0xab   :  { %v90_v60 = vadd.f32 %v89_v58, %v88_v56  ;;  %v97_v61 = vadd.f32 %v96_v59, %v95_v57 }
  0xad   :  { %v98_v62 = vmul.f32 0.0625, %v90_v60  ;;  %v99_v63 = vmul.f32 0.0625, %v97_v61 }
  0xaf   :  { %v100_v0 = vadd.f32 1e-05, %v98_v62  ;;  %v101_v1 = vadd.f32 1e-05, %v99_v63 }
  0xb1   :  { %134 = vrsqrt.f32 %v100_v0 }
  0xb2   :  { %136 = vrsqrt.f32 %v101_v1 }
  0xbb   :  { %v135_v2 = vpop.eup %134 }
  0xbc   :  { %v137_v3 = vpop.eup %136  ;;  %v104_v4 = vmul.f32 %v135_v2, %v76_v40  ;;  %v106_v5 = vmul.f32 %v135_v2, %v78_v42 }
  0xbd   :  { %v105_v6 = vmul.f32 %v137_v3, %v77_v41  ;;  %v107_v7 = vmul.f32 %v137_v3, %v79_v43 }
  0xbe   :  { %108 = vst [vmem:[#allocation2] sm:$0xff] %v104_v4  ;;  %110 = vst [vmem:[#allocation2 + $0x10] sm:$0xff] %v106_v5 }
  0xbf   :  { %109 = vst [vmem:[#allocation2 + $0x8] sm:$0xff] %v105_v6  ;;  %111 = vst [vmem:[#allocation2 + $0x18] sm:$0xff] %v107_v7 }
  0xc0   :  { %149 = shalt.err (!%p146_p4)
}
  0xc1   :  { %s150_s24 = scalar_lea.hbm %s216_s3, 512 }
  0xc2   :  { %p151_p5 = scmp.ne.s32.totalorder %s216_s3, %s150_s24  ;;  %p154_p6 = scmp.lt.u32.totalorder %s150_s24, %s216_s3 }
  0xc4   :  { %p156_p7 = pnand %p154_p6, %p151_p5 }
  0xc6   :  { %159 = shalt.err (!%p156_p7)
}
  0xc7   :  { %s164_s29 = smov 256   ;;  %s165_s30 = smov 16  }
  0xc8   :  { %123 = dma.vmem_to_hbm [thread:$0]  %s118_s1, 512, %s216_s3, [#allocation3], %s164_s29, %s164_s29, %s165_s30  }
  0xc9   :  { %160 = dma.done.wait [#allocation3], 512  }
  0xca   :  { %161 = vsyncadd [#allocation3], 4294966784 }
  0xcb   :  { %127 = vsyncpa [#allocation3], 1 }

</bundles_post_ra>
